<compile_context>
chip_gen: v6e
topology: v6e:2x2x1
jax: 0.10.0
libtpu: 0.0.40
codegen_flags: <defaults>
</compile_context>

<pallas_src>
import functools

import jax
import jax.numpy as jnp
from jax.experimental import pallas as pl
from jax.experimental.pallas import tpu as pltpu


def _round_up(x, m):
    return (x + m - 1) // m * m


def _focal_loss_kernel(x_ref, t_ref, partial_ref, *, alpha, gamma,
                       binary_targets, needs_mask, valid_rows, rem_cols,
                       block_rows, sub_rows, acc_rows, cols):
    c = pl.program_id(0)          # parallel split axis
    i = pl.program_id(1)          # reduction ('arbitrary') axis
    steps = pl.num_programs(1)

    @pl.when(i == 0)
    def _init():
        partial_ref[...] = jnp.zeros_like(partial_ref)

    # Global row offset of this block (for the ragged-tail mask).
    row0 = (c * steps + i) * block_rows
    n_sub = block_rows // sub_rows

    def body(j, acc):
        off = pl.multiple_of(j * sub_rows, sub_rows)
        x = x_ref[pl.ds(off, sub_rows), :].astype(jnp.float32)
        t = t_ref[pl.ds(off, sub_rows), :].astype(jnp.float32)

        # Numerically-stable BCE-with-logits:
        #   bce = max(x, 0) - x*t + log1p(exp(-|x|))
        e = jnp.exp(-jnp.abs(x))            # EUP
        mx = jnp.maximum(x, 0.0)
        xt = x * t
        bce = mx - xt + jnp.log1p(e)        # EUP

        # pt = exp(-bce) = exp(x*t - max(x,0)) / (1 + exp(-|x|))
        if binary_targets:
            # Exact for t in {0,1}: exp(xt - mx) == where(x*(2t-1) >= 0, 1, e)
            num = jnp.where(x * (2.0 * t - 1.0) >= 0.0, 1.0, e)
        else:
            num = jnp.exp(xt - mx)          # EUP (soft-target fallback)
        pt = num * pl.reciprocal(1.0 + e, approx=True)
        one_m_pt = jnp.maximum(1.0 - pt, 0.0)   # clamp against rounding pt > 1

        g = float(gamma)
        if g == 0.0:
            mod = None
        elif g.is_integer() and 1 <= int(g) <= 4:
            # integer gamma (default 2): multiply chain, no pow/exp/log
            mod = one_m_pt
            for _ in range(int(g) - 1):
                mod = mod * one_m_pt
        else:
            mod = one_m_pt ** g

        f = bce if mod is None else mod * bce
        if float(alpha) != 1.0:
            f = float(alpha) * f

        if needs_mask:
            # Ragged tail: valid iff global flat index < total element count.
            grow = row0 + off + jax.lax.broadcasted_iota(
                jnp.int32, (sub_rows, cols), 0)
            gcol = jax.lax.broadcasted_iota(jnp.int32, (sub_rows, cols), 1)
            valid = (grow < valid_rows) | ((grow == valid_rows) &
                                           (gcol < rem_cols))
            f = jnp.where(valid, f, 0.0)

        # Fold (sub_rows, 128) -> (sub_rows//acc_rows, acc_rows, 128) and sum
        # the major axis: pure VPU adds into the carried accumulator.
        return acc + f.reshape(sub_rows // acc_rows, acc_rows, cols).sum(axis=0)

    acc = jax.lax.fori_loop(0, n_sub, body,
                            jnp.zeros((acc_rows, cols), jnp.float32),
                            unroll=True)
    partial_ref[...] += acc


def focal_loss(inputs, targets, alpha=1.0, gamma=2.0, reduction="mean",
               binary_targets=True, block_rows=4096):
    """Pallas implementation of FocalLoss.forward (reduction='mean'/'sum').

    Set binary_targets=False if targets are soft (not exactly 0/1); the
    default fast path is only exact for hard binary targets.
    """
    # Mirror the PyTorch squeeze-on-trailing-dim behaviour.
    if inputs.ndim > targets.ndim and inputs.shape[-1] == 1:
        inputs = jnp.squeeze(inputs, axis=-1)
    elif targets.ndim > inputs.ndim and targets.shape[-1] == 1:
        targets = jnp.squeeze(targets, axis=-1)
    if inputs.shape != targets.shape:
        raise ValueError(
            f"Target size ({targets.shape}) must be the same as input size "
            f"({inputs.shape})")
    if reduction not in ("mean", "sum"):
        # TODO(synk): reduction='none' (full elementwise output) not wired up.
        raise NotImplementedError("only reduction='mean'/'sum' implemented")

    cols = 128
    ACC_ROWS = 32
    total = int(inputs.size)

    x = inputs.reshape(-1)
    if binary_targets:
        t = targets.reshape(-1).astype(jnp.int8)      # exact for {0,1}
    else:
        t = targets.reshape(-1).astype(jnp.float32)   # keep soft targets exact

    rows = -(-total // cols)
    pad_elems = rows * cols - total
    if pad_elems:
        # TODO(synk): a sub-128 remainder still needs this tiny pad copy to
        # make the slab reshapeable; the in-kernel mask ignores pad values.
        x = jnp.pad(x, (0, pad_elems))
        t = jnp.pad(t, (0, pad_elems))
    x2d = x.reshape(rows, cols)
    t2d = t.reshape(rows, cols)

    # Block rows: multiple of 32 (satisfies f32/bf16/int8 sublane tiling).
    eff_block_rows = min(_round_up(max(int(block_rows), 32), 32),
                         _round_up(rows, 32))
    if rows < eff_block_rows:
        # Tiny inputs only (< one block): pad rows up to one block.
        x2d = jnp.pad(x2d, ((0, eff_block_rows - rows), (0, 0)))
        t2d = jnp.pad(t2d, ((0, eff_block_rows - rows), (0, 0)))
        rows2 = eff_block_rows
    else:
        rows2 = rows

    blocks_total = -(-rows2 // eff_block_rows)
    n_splits = 2 if (blocks_total >= 2 and blocks_total % 2 == 0) else 1
    steps = blocks_total // n_splits

    sub_rows = 512 if eff_block_rows % 512 == 0 else eff_block_rows

    needs_mask = (blocks_total * eff_block_rows * cols != total)
    valid_rows = total // cols
    rem_cols = total % cols

    kernel = functools.partial(
        _focal_loss_kernel,
        alpha=float(alpha), gamma=float(gamma),
        binary_targets=bool(binary_targets),
        needs_mask=bool(needs_mask),
        valid_rows=int(valid_rows), rem_cols=int(rem_cols),
        block_rows=int(eff_block_rows), sub_rows=int(sub_rows),
        acc_rows=ACC_ROWS, cols=cols)

    in_map = lambda c, i: (c * steps + i, 0)

    partials = pl.pallas_call(
        kernel,
        out_shape=jax.ShapeDtypeStruct((n_splits * ACC_ROWS, cols),
                                       jnp.float32),
        grid_spec=pltpu.PrefetchScalarGridSpec(
            num_scalar_prefetch=0,
            grid=(n_splits, steps),
            in_specs=[
                pl.BlockSpec((eff_block_rows, cols), in_map),
                pl.BlockSpec((eff_block_rows, cols), in_map),
            ],
            # Output block index depends only on the parallel axis -> each
            # core accumulates into its own resident (32, cols) partial block.
            out_specs=pl.BlockSpec((ACC_ROWS, cols), lambda c, i: (c, 0)),
        ),
        compiler_params=pltpu.CompilerParams(
            dimension_semantics=("parallel", "arbitrary"),
            vmem_limit_bytes=48 * 1024 * 1024,
        ),
    )(x2d, t2d)

    total_sum = partials.sum()
    if reduction == "mean":
        return total_sum / jnp.float32(total)
    return total_sum


def _focal_loss_ref(inputs, targets, alpha=1.0, gamma=2.0, reduction="mean"):
    """Pure-JAX reference mirroring the PyTorch module."""
    if inputs.ndim > targets.ndim and inputs.shape[-1] == 1:
        inputs = jnp.squeeze(inputs, axis=-1)
    elif targets.ndim > inputs.ndim and targets.shape[-1] == 1:
        targets = jnp.squeeze(targets, axis=-1)
    x = inputs.astype(jnp.float32)
    t = targets.astype(jnp.float32)
    bce = jnp.maximum(x, 0.0) - x * t + jnp.log1p(jnp.exp(-jnp.abs(x)))
    pt = jnp.exp(-bce)
    f = alpha * (1.0 - pt) ** gamma * bce
    if reduction == "mean":
        return f.mean()
    return f.sum()


if __name__ == "__main__":
    key = jax.random.PRNGKey(0)
    k1, k2, k3, k4, k5, k6 = jax.random.split(key, 6)

    # Case 1: logits with a trailing singleton dim (squeezed as in the PyTorch
    # forward), hard binary targets; element count is a multiple of 128.
    B, N = 16, 128
    inputs = jax.random.normal(k1, (B, N, 1), dtype=jnp.float32)
    targets = (jax.random.uniform(k2, (B, N)) > 0.5).astype(jnp.float32)
    loss = jax.block_until_ready(
        focal_loss(inputs, targets, alpha=1.0, gamma=2.0, reduction="mean"))
    ref = _focal_loss_ref(inputs, targets)
    assert jnp.allclose(loss, ref, rtol=3e-3, atol=1e-5), (loss, ref)

    # Case 2: odd, non-divisible shape -> exercises the ragged-tail mask path.
    inputs2 = jax.random.normal(k3, (3, 37), dtype=jnp.float32)
    targets2 = (jax.random.uniform(k4, (3, 37)) > 0.5).astype(jnp.float32)
    loss2 = jax.block_until_ready(
        focal_loss(inputs2, targets2, alpha=1.0, gamma=2.0, reduction="mean"))
    ref2 = _focal_loss_ref(inputs2, targets2)
    assert jnp.allclose(loss2, ref2, rtol=3e-3, atol=1e-5), (loss2, ref2)

    # Case 3: soft targets, sum reduction -> general (non-binary) path.
    inputs3 = jax.random.normal(k5, (4, 200), dtype=jnp.float32)
    targets3 = jax.random.uniform(k6, (4, 200), dtype=jnp.float32)
    loss3 = jax.block_until_ready(
        focal_loss(inputs3, targets3, alpha=0.5, gamma=2.0, reduction="sum",
                   binary_targets=False))
    ref3 = _focal_loss_ref(inputs3, targets3, alpha=0.5, gamma=2.0,
                           reduction="sum")
    assert jnp.allclose(loss3, ref3, rtol=3e-3, atol=1e-3), (loss3, ref3)

    print("KERNEL_OK")
</pallas_src>

<mosaic_0001>
module attributes {stable_mosaic.version = 11 : i64} {
  func.func @_focal_loss_kernel(%arg0: i32, %arg1: i32, %arg2: memref<32x128xf32, #tpu.memory_space<vmem>>, %arg3: memref<32x128xi8, #tpu.memory_space<vmem>>, %arg4: memref<32x128xf32, #tpu.memory_space<vmem>>) attributes {dimension_semantics = [#tpu.dimension_semantics<parallel>, #tpu.dimension_semantics<arbitrary>], iteration_bounds = array<i64: 1, 1>, scalar_prefetch = 0 : i64, scratch_operands = 0 : i64, tpu.core_type = #tpu.core_type<tc>, window_params = [{transform_indices = @transform_0, window_bounds = array<i64: 32, 128>}, {transform_indices = @transform_1, window_bounds = array<i64: 32, 128>}, {transform_indices = @transform_2, window_bounds = array<i64: 32, 128>}]} {
    %c0_i32 = arith.constant 0 : i32
    %0 = arith.cmpi eq, %arg1, %c0_i32 : i32
    %1 = arith.extui %0 : i1 to i32
    %c0_i32_0 = arith.constant 0 : i32
    %2 = arith.cmpi ne, %1, %c0_i32_0 : i32
    scf.if %2 {
      %cst_22 = arith.constant 0.000000e+00 : f32
      %64 = vector.broadcast %cst_22 : f32 to vector<32x128xf32>
      %c0_23 = arith.constant 0 : index
      %c0_24 = arith.constant 0 : index
      %65 = vector.load %arg4[%c0_23, %c0_24] : memref<32x128xf32, #tpu.memory_space<vmem>>, vector<32x128xf32>
      tpu.vector_store %arg4[%c0_23, %c0_24], %64 {strides = array<i32>} : memref<32x128xf32, #tpu.memory_space<vmem>>, vector<32x128xf32>,
    } else {
    }
    %c1_i32 = arith.constant 1 : i32
    %3 = arith.muli %arg0, %c1_i32 : i32
    %4 = arith.addi %3, %arg1 : i32
    %c32_i32 = arith.constant 32 : i32
    %5 = arith.muli %4, %c32_i32 : i32
    %cst = arith.constant 0.000000e+00 : f32
    %6 = vector.broadcast %cst : f32 to vector<32x128xf32>
    %c0_i32_1 = arith.constant 0 : i32
    %c32_i32_2 = arith.constant 32 : i32
    %7 = arith.muli %c0_i32_1, %c32_i32_2 : i32
    %8 = tpu.assume_multiple %7, 32 : i32
    %9 = arith.index_cast %8 : i32 to index
    %c0 = arith.constant 0 : index
    %10 = vector.load %arg2[%9, %c0] : memref<32x128xf32, #tpu.memory_space<vmem>>, vector<32x128xf32>
    %11 = arith.index_cast %8 : i32 to index
    %c0_3 = arith.constant 0 : index
    %12 = vector.load %arg3[%11, %c0_3] : memref<32x128xi8, #tpu.memory_space<vmem>>, vector<32x128xi8>
    %13 = arith.sitofp %12 : vector<32x128xi8> to vector<32x128xf32>
    %14 = math.absf %10 : vector<32x128xf32>
    %cst_4 = arith.constant 0.000000e+00 : f32
    %15 = vector.broadcast %cst_4 : f32 to vector<32x128xf32>
    %16 = arith.subf %15, %14 : vector<32x128xf32>
    %17 = math.exp %16 : vector<32x128xf32>
    %cst_5 = arith.constant 0.000000e+00 : f32
    %18 = vector.broadcast %cst_5 : f32 to vector<32x128xf32>
    %19 = arith.maximumf %10, %18 : vector<32x128xf32>
    %20 = arith.mulf %10, %13 : vector<32x128xf32>
    %21 = arith.subf %19, %20 : vector<32x128xf32>
    %22 = math.log1p %17 : vector<32x128xf32>
    %23 = arith.addf %21, %22 : vector<32x128xf32>
    %cst_6 = arith.constant 2.000000e+00 : f32
    %24 = vector.broadcast %cst_6 : f32 to vector<32x128xf32>
    %25 = arith.mulf %24, %13 : vector<32x128xf32>
    %cst_7 = arith.constant 1.000000e+00 : f32
    %26 = vector.broadcast %cst_7 : f32 to vector<32x128xf32>
    %27 = arith.subf %25, %26 : vector<32x128xf32>
    %28 = arith.mulf %10, %27 : vector<32x128xf32>
    %cst_8 = arith.constant 0.000000e+00 : f32
    %29 = vector.broadcast %cst_8 : f32 to vector<32x128xf32>
    %30 = arith.cmpf oge, %28, %29 : vector<32x128xf32>
    %cst_9 = arith.constant 1.000000e+00 : f32
    %31 = vector.broadcast %cst_9 : f32 to vector<32x128xf32>
    %32 = arith.select %30, %31, %17 : vector<32x128xi1>, vector<32x128xf32>
    %cst_10 = arith.constant 1.000000e+00 : f32
    %33 = vector.broadcast %cst_10 : f32 to vector<32x128xf32>
    %34 = arith.addf %33, %17 : vector<32x128xf32>
    %35 = tpu.reciprocal %34 {approx = true} : vector<32x128xf32> -> vector<32x128xf32>
    %36 = arith.mulf %32, %35 : vector<32x128xf32>
    %cst_11 = arith.constant 1.000000e+00 : f32
    %37 = vector.broadcast %cst_11 : f32 to vector<32x128xf32>
    %38 = arith.subf %37, %36 : vector<32x128xf32>
    %cst_12 = arith.constant 0.000000e+00 : f32
    %39 = vector.broadcast %cst_12 : f32 to vector<32x128xf32>
    %40 = arith.maximumf %38, %39 : vector<32x128xf32>
    %41 = arith.mulf %40, %40 : vector<32x128xf32>
    %42 = arith.mulf %41, %23 : vector<32x128xf32>
    %43 = arith.addi %5, %8 : i32
    %44 = tpu.iota {dimensions = array<i32: 0>} : vector<32x128xi32>
    %45 = vector.broadcast %43 : i32 to vector<32x128xi32>
    %46 = arith.addi %45, %44 : vector<32x128xi32>
    %47 = tpu.iota {dimensions = array<i32: 1>} : vector<32x128xi32>
    %c16_i32 = arith.constant 16 : i32
    %48 = vector.broadcast %c16_i32 : i32 to vector<32x128xi32>
    %49 = arith.cmpi slt, %46, %48 : vector<32x128xi32>
    %c16_i32_13 = arith.constant 16 : i32
    %50 = vector.broadcast %c16_i32_13 : i32 to vector<32x128xi32>
    %51 = arith.cmpi eq, %46, %50 : vector<32x128xi32>
    %c0_i32_14 = arith.constant 0 : i32
    %52 = vector.broadcast %c0_i32_14 : i32 to vector<32x128xi32>
    %53 = arith.cmpi slt, %47, %52 : vector<32x128xi32>
    %54 = arith.andi %51, %53 : vector<32x128xi1>
    %55 = arith.ori %49, %54 : vector<32x128xi1>
    %cst_15 = arith.constant 0.000000e+00 : f32
    %56 = vector.broadcast %cst_15 : f32 to vector<32x128xf32>
    %57 = arith.select %55, %42, %56 : vector<32x128xi1>, vector<32x128xf32>
    %58 = vector.shape_cast %57 : vector<32x128xf32> to vector<1x32x128xf32>
    %cst_16 = arith.constant dense<0.000000e+00> : vector<32x128xf32>
    %59 = vector.multi_reduction <add>, %58, %cst_16 [0] : vector<1x32x128xf32> to vector<32x128xf32>
    %60 = arith.addf %6, %59 : vector<32x128xf32>
    %c1_i32_17 = arith.constant 1 : i32
    %c0_18 = arith.constant 0 : index
    %c0_19 = arith.constant 0 : index
    %61 = vector.load %arg4[%c0_18, %c0_19] : memref<32x128xf32, #tpu.memory_space<vmem>>, vector<32x128xf32>
    %62 = arith.addf %61, %60 : vector<32x128xf32>
    %c0_20 = arith.constant 0 : index
    %c0_21 = arith.constant 0 : index
    %63 = vector.load %arg4[%c0_20, %c0_21] : memref<32x128xf32, #tpu.memory_space<vmem>>, vector<32x128xf32>
    tpu.vector_store %arg4[%c0_20, %c0_21], %62 {strides = array<i32>} : memref<32x128xf32, #tpu.memory_space<vmem>>, vector<32x128xf32>,
    return
  }
  func.func @transform_0(%arg0: i32, %arg1: i32) -> (i32, i32) {
    %c1_i32 = arith.constant 1 : i32
    %0 = arith.muli %arg0, %c1_i32 : i32
    %1 = arith.addi %0, %arg1 : i32
    %c0_i32 = arith.constant 0 : i32
    %c0_i32_0 = arith.constant 0 : i32
    return %1, %c0_i32 : i32, i32
  }
  func.func @transform_1(%arg0: i32, %arg1: i32) -> (i32, i32) {
    %c1_i32 = arith.constant 1 : i32
    %0 = arith.muli %arg0, %c1_i32 : i32
    %1 = arith.addi %0, %arg1 : i32
    %c0_i32 = arith.constant 0 : i32
    %c0_i32_0 = arith.constant 0 : i32
    return %1, %c0_i32 : i32, i32
  }
  func.func @transform_2(%arg0: i32, %arg1: i32) -> (i32, i32) {
    %c0_i32 = arith.constant 0 : i32
    %c0_i32_0 = arith.constant 0 : i32
    return %arg0, %c0_i32 : i32, i32
  }
}

</mosaic_0001>

<bundles_post_ra>
// kernel: tpu_custom_call.1
= control target key start
LH: loop header
LB: loop body
LE: loop exit
PB: predicated region body
PF: predicated region fallthrough
CT: control target
= control target key end

     0   :  { %7 = vsyncpa [#allocation3], 0  ;;  %s389_s0 = inlined_call_operand.hbm [shape: f32[32,128], index: 0, kind: input, shape index: {}]   ;;  %s390_s1 = inlined_call_operand.hbm [shape: s8[32,128], index: 1, kind: input, shape index: {}]   ;;  %s391_s2 = inlined_call_operand.hbm [shape: f32[32,128], index: 2, kind: output, shape index: {}]  }
   0x1   :  { %8 = vsyncpa [#allocation6], 0 }
   0x2   :  { %9 = vsyncpa [#allocation4], 0  ;;  %s347_s9 = smov [#allocation2]  }
   0x3   :  { %s19_s10 = sshll.u32 %s347_s9, 4  ;;  %s20_s10 = int_to_ptr.vmem [resolvable:$true] %s19_s10 }
   0x4   :  { %s289_s11 = scalar_lea.vmem %s20_s10, 512  ;;  %p294_p1 = scmp.lt.s32.totalorder %s20_s10, %s20_s10 }
   0x5   :  { %p290_p0 = scmp.ne.s32.totalorder %s20_s10, %s289_s11  ;;  %p295_p2 = scmp.lt.s32.totalorder %s289_s11, %s289_s11 }
   0x7   :  { %p296_p3 = por %p295_p2, %p294_p1 }
   0x9   :  { %p297_p4 = pnand %p296_p3, %p290_p0 }
   0xb   :  { %300 = shalt.err (!%p297_p4)
}
   0xc   :  { %s348_s12 = smov 128   ;;  %s349_s13 = smov 8  }
   0xd   :  { %25 = dma.hbm_to_vmem [thread:$0]  %s389_s0, 512, %s20_s10, [#allocation3], %s348_s12, %s348_s12, %s349_s13  }
   0xe   :  { %s350_s16 = smov [#allocation5]  }
   0xf   :  { %s35_s17 = sshll.u32 %s350_s16, 4  ;;  %s36_s17 = int_to_ptr.vmem [resolvable:$true] %s35_s17 }
  0x10   :  { %s309_s18 = scalar_lea.vmem %s36_s17, 128  ;;  %p314_p6 = scmp.lt.s32.totalorder %s36_s17, %s36_s17 }
  0x11   :  { %p310_p5 = scmp.ne.s32.totalorder %s36_s17, %s309_s18  ;;  %p315_p7 = scmp.lt.s32.totalorder %s309_s18, %s309_s18 }
  0x13   :  { %p316_p8 = por %p315_p7, %p314_p6 }
  0x15   :  { %p317_p9 = pnand %p316_p8, %p310_p5 }
  0x17   :  { %320 = shalt.err (!%p317_p9)
}
  0x18   :  { %38 = dma.hbm_to_vmem [thread:$0]  %s390_s1, 128, %s36_s17, [#allocation6]  }
  0x19   :  { %341 = dma.done.wait [#allocation3], 512  }
  0x1a   :  { %342 = vsyncadd [#allocation3], 4294966784 }
  0x1b   :  { %343 = dma.done.wait [#allocation6], 128  }
  0x1c   :  { %344 = vsyncadd [#allocation6], 4294967168  ;;  %v351_v0 = vmov 0.0   ;;  %v58_v1 = vld [vmem:[#allocation2] sm:$0xff]  ;;  %v59_v2 = vld [vmem:[#allocation2 + $0x8] sm:$0xff]  ;;  %s352_s0 = smov [#allocation7]  }
  0x1d   :  { %239 = vst [vmem:[#allocation7 + $0x10] sm:$0xff] %v351_v0  ;;  %240 = vst [vmem:[#allocation7 + $0x18] sm:$0xff] %v351_v0  ;;  %v71_v3 = vand.u32 2147483647, %v58_v1  ;;  %v72_v4 = vand.u32 2147483647, %v59_v2 }
  0x1e   :  { %v62_v9 = vld [vmem:[#allocation5] sm:$0xff]  ;;  %v87_v29 = vmax.f32 %v58_v1, 0.0  ;;  %v88_v36 = vmax.f32 %v59_v2, 0.0  ;;  %s246_s1 = sshll.u32 %s352_s0, 4  ;;  %s247_s1 = int_to_ptr.vmem [resolvable:$true] %s246_s1 }
  0x1f   :  { %v75_v5 = vsub.f32 0.0, %v71_v3  ;;  %v76_v6 = vsub.f32 0.0, %v72_v4  ;;  %v63_v10 = vunpack.c.0.s8 %v62_v9  ;;  %v64_v11 = vunpack.c.1.s8 %v62_v9  ;;  %s321_s21 = scalar_lea.vmem %s247_s1, 512  ;;  %p326_p11 = scmp.lt.s32.totalorder %s247_s1, %s247_s1 }
  0x20   :  { %p322_p10 = scmp.ne.s32.totalorder %s247_s1, %s321_s21  ;;  %p327_p12 = scmp.lt.s32.totalorder %s321_s21, %s321_s21 }
  0x21   :  { %v79_v7 = vmul.f32 1.442695, %v75_v5  ;;  %v81_v8 = vmul.f32 1.442695, %v76_v6  ;;  %v67_v12 = vcvt.s32.f32 %v63_v10  ;;  %v68_v13 = vcvt.s32.f32 %v64_v11 }
  0x22   :  { %p328_p13 = por %p327_p12, %p326_p11 }
  0x23   :  { %269 = vpow2.f32 %v79_v7  ;;  %v139_v15 = vmul.f32 2.0, %v67_v12  ;;  %v140_v19 = vmul.f32 2.0, %v68_v13  ;;  %v91_v30 = vmul.f32 %v67_v12, %v58_v1 }
  0x24   :  { %271 = vpow2.f32 %v81_v8  ;;  %v92_v37 = vmul.f32 %v68_v13, %v59_v2  ;;  %p329_p0 = pnand %p328_p13, %p322_p10 }
  0x25   :  { %v259_v20 = vadd.f32 -1.0, %v139_v15  ;;  %v260_v21 = vadd.f32 -1.0, %v140_v19  ;;  %v95_v43 = vsub.f32 %v87_v29, %v91_v30 }
  0x26   :  { %v96_v49 = vsub.f32 %v88_v36, %v92_v37 }
  0x27   :  { %v147_v23 = vmul.f32 %v259_v20, %v58_v1  ;;  %v148_v25 = vmul.f32 %v260_v21, %v59_v2 }
  0x29   :  { %vm151_vm0 = vcmp.ge.f32.partialorder %v147_v23, 0.0  ;;  %vm152_vm1 = vcmp.ge.f32.partialorder %v148_v25, 0.0 }
  0x30   :  { %v270_v14 = vpop.eup %269 }
  0x31   :  { %v272_v16 = vpop.eup %271  ;;  %v99_v17 = vadd.f32 1.0, %v270_v14  ;;  %v102_v22 = vmul.f32 -0.5, %v270_v14  ;;  %v105_v27 = vand.u32 2147483647, %v270_v14  ;;  %v155_v33 = vsel %vm151_vm0, 1.0, %v270_v14 }
  0x32   :  { %v108_v18 = vadd.f32 1.0, %v272_v16  ;;  %v111_v24 = vmul.f32 -0.5, %v272_v16  ;;  %v114_v31 = vand.u32 2147483647, %v272_v16  ;;  %v156_v41 = vsel %vm152_vm1, 1.0, %v272_v16 }
  0x33   :  { %273 = vlog2.f32 %v99_v17  ;;  %v103_v26 = vadd.f32 1.0, %v102_v22  ;;  %vm377_vm2 = vcmp.lt.f32.partialorder %v105_v27, 0.0004427343 }
  0x34   :  { %275 = vrcp.f32 %v99_v17  ;;  %v112_v28 = vadd.f32 1.0, %v111_v24  ;;  %vm115_vm3 = vcmp.lt.f32.partialorder %v114_v31, 0.0004427343 }
  0x35   :  { %277 = vlog2.f32 %v108_v18  ;;  %v104_v32 = vmul.f32 %v270_v14, %v103_v26 }
  0x36   :  { %279 = vrcp.f32 %v108_v18  ;;  %v113_v40 = vmul.f32 %v272_v16, %v112_v28 }
  0x40   :  { %v274_v34 = vpop.eup %273 }
  0x41   :  { %v276_v38 = vpop.eup %275  ;;  %v101_v39 = vmul.f32 0.6931472, %v274_v34 }
  0x42   :  { %v278_v42 = vpop.eup %277  ;;  %v167_v44 = vmul.f32 %v276_v38, %v155_v33 }
  0x43   :  { %v280_v45 = vpop.eup %279  ;;  %v107_v46 = vsel %vm377_vm2, %v104_v32, %v101_v39  ;;  %v110_v47 = vmul.f32 0.6931472, %v278_v42 }
  0x44   :  { %v171_v48 = vsub.f32 1.0, %v167_v44  ;;  %v168_v50 = vmul.f32 %v280_v45, %v156_v41  ;;  %v135_v52 = vadd.f32 %v107_v46, %v95_v43 }
  0x45   :  { %v116_v51 = vsel %vm115_vm3, %v113_v40, %v110_v47 }
  0x46   :  { %v175_v53 = vmax.f32 %v171_v48, 0.0  ;;  %v172_v54 = vsub.f32 1.0, %v168_v50  ;;  %v136_v56 = vadd.f32 %v116_v51, %v96_v49 }
  0x48   :  { %v179_v55 = vmul.f32 %v175_v53, %v175_v53  ;;  %v176_v57 = vmax.f32 %v172_v54, 0.0 }
  0x4a   :  { %v183_v58 = vmul.f32 %v179_v55, %v135_v52  ;;  %v180_v59 = vmul.f32 %v176_v57, %v176_v57 }
  0x4c   :  { %v184_v60 = vmul.f32 %v180_v59, %v136_v56  ;;  %237 = vst [vmem:[#allocation7] sm:$0xff] %v183_v58 }
  0x4e   :  { %238 = vst [vmem:[#allocation7 + $0x8] sm:$0xff] %v184_v60 }
  0x4f   :  { %332 = shalt.err (!%p329_p0)
}
  0x50   :  { %252 = dma.vmem_to_hbm [thread:$0]  %s247_s1, 512, %s391_s2, [#allocation4], %s348_s12, %s348_s12, %s349_s13  }
  0x51   :  { %345 = dma.done.wait [#allocation4], 512  }
  0x52   :  { %346 = vsyncadd [#allocation4], 4294966784 }
  0x53   :  { %256 = vsyncpa [#allocation3], 1 }
  0x54   :  { %257 = vsyncpa [#allocation6], 1 }
  0x55   :  { %258 = vsyncpa [#allocation4], 1 }

</bundles_post_ra>
